<compile_context>
chip_gen: v7x
topology: tpu7x:2x2x1
jax: 0.10.0
libtpu: 0.0.40
codegen_flags: <defaults>
</compile_context>

<pallas_src>
import functools

import jax
import jax.numpy as jnp
from jax import lax
from jax.experimental import pallas as pl
from jax.experimental.pallas import tpu as pltpu


def _round_up(x, m):
    return ((x + m - 1) // m) * m


def _write_partials(out_ref, num, den):
    # Lane-dense (8,128)-aligned writeback of the two per-tile scalars.
    r = lax.broadcasted_iota(jnp.int32, (1, 8, 128), 1)
    l = lax.broadcasted_iota(jnp.int32, (1, 8, 128), 2)
    out_ref[...] = jnp.where(
        (r == 0) & (l == 0), num,
        jnp.where((r == 0) & (l == 1), den, 0.0))


def _wce_kernel_lanes(logits_ref, targets_ref, wt_ref, out_ref, *, n_rows, tile_n):
    # Lane-dense path for small C (< 128).
    # logits_ref : (TN, C)   model dtype (f32/bf16)
    # targets_ref: (1, TN)   int32
    # wt_ref     : (1, TN)   f32   (class_weights[targets], gathered in wrapper)
    # out_ref    : (1, 8, 128) f32; [0,0,0]=num, [0,0,1]=den
    x = logits_ref[...].astype(jnp.float32)            # (TN, C)
    xt = jnp.transpose(x)                              # (C, TN): in-kernel relayout (XLU)
    c, tn = xt.shape
    tgt = targets_ref[...]                             # (1, TN)
    w = wt_ref[...].astype(jnp.float32)                # (1, TN)

    # Ragged-N mask: columns (= original rows) past the true row count hold
    # whatever stale data the partial boundary DMA left behind.
    base = pl.program_id(0) * tile_n
    lane = lax.broadcasted_iota(jnp.int32, (1, tn), 1)
    valid = (base + lane) < n_rows                     # (1, TN)

    # Numerically stable logsumexp over the class axis (sublane reduction).
    m = jnp.max(xt, axis=0, keepdims=True)             # (1, TN)
    lse = m + jnp.log(jnp.sum(jnp.exp(xt - m), axis=0, keepdims=True))

    # Target logit via a single compare mask (class index on sublanes).
    cls = lax.broadcasted_iota(jnp.int32, (c, tn), 0)  # (C, TN)
    x_t = jnp.sum(jnp.where(cls == tgt, xt, 0.0), axis=0, keepdims=True)

    nll = lse - x_t                                    # (1, TN) = -log p[target]
    # Mask AFTER the product so garbage (possibly inf/NaN) rows select to 0.
    num = jnp.sum(jnp.where(valid, w * nll, 0.0))
    den = jnp.sum(jnp.where(valid, w, 0.0))
    _write_partials(out_ref, num, den)


def _wce_kernel_rows(logits_ref, targets_ref, wt_ref, out_ref, *, n_rows, tile_n):
    # Row-layout path for C >= 128 (already lane-dense) and lowering fallback.
    # logits_ref : (TN, C); targets_ref/wt_ref: (TN, 1).
    x = logits_ref[...].astype(jnp.float32)
    tgt = targets_ref[...]                             # (TN, 1)
    w = wt_ref[...].astype(jnp.float32)                # (TN, 1)
    tn, c = x.shape

    base = pl.program_id(0) * tile_n
    row = lax.broadcasted_iota(jnp.int32, (tn, 1), 0)
    valid = (base + row) < n_rows                      # (TN, 1)

    m = jnp.max(x, axis=-1, keepdims=True)
    lse = m + jnp.log(jnp.sum(jnp.exp(x - m), axis=-1, keepdims=True))
    col = lax.broadcasted_iota(jnp.int32, (tn, c), 1)
    x_t = jnp.sum(jnp.where(col == tgt, x, 0.0), axis=-1, keepdims=True)

    nll = lse - x_t
    num = jnp.sum(jnp.where(valid, w * nll, 0.0))
    den = jnp.sum(jnp.where(valid, w, 0.0))
    _write_partials(out_ref, num, den)


def _vmem_budget():
    """Returns (working-set budget bytes, vmem_limit_bytes or None)."""
    kind = ""
    try:
        kind = jax.devices()[0].device_kind.lower()
    except Exception:
        pass
    if "v6" in kind:
        # v6e: 128 MiB physical VMEM. Big tiles amortize the ~600-cycle
        # per-step overhead; raise the scoped limit accordingly.
        return 48 * 1024 * 1024, 96 * 1024 * 1024
    if "v7" in kind or "7x" in kind:
        # v7x: 64 MiB VMEM per TensorCore; keep explicit headroom (<= ~48 MiB).
        return 24 * 1024 * 1024, 44 * 1024 * 1024
    # v5e (16 MiB default scoped VMEM) and unknown chips: stay conservative so
    # the double-buffered tile + f32 temporaries fit without raising the limit.
    return 12 * 1024 * 1024, None


def _pick_tile_n(n, c, itemsize, budget_bytes, lane_dense):
    # f32-equivalent working set per sample row:
    #   double-buffered input tile + f32 cast + transposed copy + exp result
    #   + hit/select intermediates + per-row (targets/weights/valid) vectors.
    per_row = 2 * c * itemsize + 5 * c * 4 + 32
    rows = max(8, budget_bytes // per_row)
    # Lane-dense path keeps the sample axis on lanes -> use 128-row quanta
    # (also keeps every aux BlockSpec minor dim a multiple of 128).
    quantum = 128 if lane_dense else 8
    rows = min(rows, _round_up(n, quantum))
    rows = max(quantum, (rows // quantum) * quantum)
    return rows


def weighted_cross_entropy_loss(logits, targets, class_weights, *, tile_n=None):
    """logits: (N, C) f32/bf16; targets: (N,) int; class_weights: (C,) float."""
    n, c = logits.shape
    itemsize = jnp.dtype(logits.dtype).itemsize

    use_lane_dense = c < 128
    quantum = 128 if use_lane_dense else 8

    budget, vmem_limit = _vmem_budget()
    if tile_n is None:
        tile_n = _pick_tile_n(n, c, itemsize, budget, use_lane_dense)
    else:
        tile_n = max(quantum, _round_up(int(tile_n), quantum))
    grid_n = (n + tile_n - 1) // tile_n

    targets_i32 = targets.astype(jnp.int32)
    weights_f32 = class_weights.astype(jnp.float32)
    # Per-sample weight gather: N floats, negligible vs the N*C logits stream.
    w_t = weights_f32[targets_i32]

    cost = pl.CostEstimate(
        flops=int(8 * n * c),
        transcendentals=int(n * c),
        bytes_accessed=int(n * c * itemsize + n * 8 + grid_n * 8 * 128 * 4),
    )
    compiler_params = pltpu.CompilerParams(
        dimension_semantics=("parallel",),   # shard N-tiles across TCs on v7x
        vmem_limit_bytes=vmem_limit,
    )
    out_shape = jax.ShapeDtypeStruct((grid_n, 8, 128), jnp.float32)
    out_spec = pl.BlockSpec((1, 8, 128), lambda i: (i, 0, 0))

    def run_lane_dense():
        kern = functools.partial(_wce_kernel_lanes, n_rows=n, tile_n=tile_n)
        return pl.pallas_call(
            kern,
            out_shape=out_shape,
            grid=(grid_n,),
            in_specs=[
                pl.BlockSpec((tile_n, c), lambda i: (i, 0)),    # logits N-tile
                pl.BlockSpec((1, tile_n), lambda i: (0, i)),    # targets (lanes)
                pl.BlockSpec((1, tile_n), lambda i: (0, i)),    # w[targets]
            ],
            out_specs=out_spec,
            compiler_params=compiler_params,
            cost_estimate=cost,
        )(logits, targets_i32.reshape(1, n), w_t.reshape(1, n))

    def run_rows():
        kern = functools.partial(_wce_kernel_rows, n_rows=n, tile_n=tile_n)
        return pl.pallas_call(
            kern,
            out_shape=out_shape,
            grid=(grid_n,),
            in_specs=[
                pl.BlockSpec((tile_n, c), lambda i: (i, 0)),    # logits N-tile
                pl.BlockSpec((tile_n, 1), lambda i: (i, 0)),    # targets
                pl.BlockSpec((tile_n, 1), lambda i: (i, 0)),    # w[targets]
            ],
            out_specs=out_spec,
            compiler_params=compiler_params,
            cost_estimate=cost,
        )(logits, targets_i32.reshape(n, 1), w_t.reshape(n, 1))

    if use_lane_dense:
        try:
            partials = run_lane_dense()
        except Exception:
            # Guard: if the in-kernel (TN,C)->(C,TN) relayout fails to lower on
            # this jax/libtpu version, fall back to the row-layout kernel
            # (correct, just lane-sparse for small C).
            partials = run_rows()
    else:
        partials = run_rows()

    num = jnp.sum(partials[:, 0, 0])
    den = jnp.sum(partials[:, 0, 1])
    # den == 0 (all-zero selected weights) -> nan/inf, matching PyTorch.
    return num / den


def _reference(logits, targets, class_weights):
    logits_f32 = logits.astype(jnp.float32)
    logp = jax.nn.log_softmax(logits_f32, axis=-1)
    logp_t = jnp.take_along_axis(
        logp, targets[:, None].astype(jnp.int32), axis=-1)[:, 0]
    w_t = class_weights[targets]
    return jnp.sum(-w_t * logp_t) / jnp.sum(w_t)


if __name__ == "__main__":
    key = jax.random.PRNGKey(0)

    # --- Test 1: small shapes matching the module's typical use -------------
    k1, k2 = jax.random.split(key)
    N, C = 8, 4
    logits = jax.random.normal(k1, (N, C), dtype=jnp.float32)
    targets = jax.random.randint(k2, (N,), 0, C, dtype=jnp.int32)
    class_weights = jnp.array([1.0, 2.0, 0.5, 1.5], dtype=jnp.float32)

    loss = weighted_cross_entropy_loss(logits, targets, class_weights)
    jax.block_until_ready(loss)
    ref = _reference(logits, targets, class_weights)
    assert jnp.allclose(loss, ref, rtol=1e-5, atol=1e-5), (loss, ref)

    # --- Test 2: lane-dense path, multiple tiles + ragged last tile ---------
    k3, k4, k5 = jax.random.split(key, 3)
    N2, C2 = 300, 37
    logits2 = jax.random.normal(k3, (N2, C2), dtype=jnp.float32)
    targets2 = jax.random.randint(k4, (N2,), 0, C2, dtype=jnp.int32)
    weights2 = jax.random.uniform(k5, (C2,), dtype=jnp.float32) + 0.1

    loss2 = weighted_cross_entropy_loss(logits2, targets2, weights2, tile_n=128)
    jax.block_until_ready(loss2)
    ref2 = _reference(logits2, targets2, weights2)
    assert jnp.allclose(loss2, ref2, rtol=1e-5, atol=1e-5), (loss2, ref2)

    # --- Test 3: bf16 logits pass straight through (cast inside kernel) -----
    logits3 = logits2.astype(jnp.bfloat16)
    loss3 = weighted_cross_entropy_loss(logits3, targets2, weights2, tile_n=128)
    jax.block_until_ready(loss3)
    ref3 = _reference(logits3, targets2, weights2)
    assert jnp.allclose(loss3, ref3, rtol=1e-3, atol=1e-3), (loss3, ref3)

    # --- Test 4: row-layout path (C >= 128), grid > 1 + ragged last tile ----
    k6, k7, k8 = jax.random.split(jax.random.PRNGKey(0), 3)
    N4, C4 = 150, 256
    logits4 = jax.random.normal(k6, (N4, C4), dtype=jnp.float32)
    targets4 = jax.random.randint(k7, (N4,), 0, C4, dtype=jnp.int32)
    weights4 = jax.random.uniform(k8, (C4,), dtype=jnp.float32) + 0.1

    loss4 = weighted_cross_entropy_loss(logits4, targets4, weights4, tile_n=64)
    jax.block_until_ready(loss4)
    ref4 = _reference(logits4, targets4, weights4)
    assert jnp.allclose(loss4, ref4, rtol=1e-5, atol=1e-5), (loss4, ref4)

    print("KERNEL_OK")
</pallas_src>

<mosaic_0001>
module attributes {stable_mosaic.version = 11 : i64} {
  func.func @_wce_kernel_lanes(%arg0: i32, %arg1: memref<128x4xf32, #tpu.memory_space<vmem>>, %arg2: memref<1x128xi32, #tpu.memory_space<vmem>>, %arg3: memref<1x128xf32, #tpu.memory_space<vmem>>, %arg4: memref<1x8x128xf32, #tpu.memory_space<vmem>>) attributes {dimension_semantics = [#tpu.dimension_semantics<parallel>], iteration_bounds = array<i64: 1>, scalar_prefetch = 0 : i64, scratch_operands = 0 : i64, tpu.core_type = #tpu.core_type<tc>, window_params = [{transform_indices = @transform_0, window_bounds = array<i64: 128, 4>}, {transform_indices = @transform_1, window_bounds = array<i64: 1, 128>}, {transform_indices = @transform_2, window_bounds = array<i64: 1, 128>}, {transform_indices = @transform_3, window_bounds = array<i64: 1, 8, 128>}]} {
    %c0 = arith.constant 0 : index
    %c0_0 = arith.constant 0 : index
    %0 = vector.load %arg1[%c0, %c0_0] : memref<128x4xf32, #tpu.memory_space<vmem>>, vector<128x4xf32>
    %1 = tpu.transpose %0, [1, 0] : vector<128x4xf32> -> vector<4x128xf32>
    %c0_1 = arith.constant 0 : index
    %c0_2 = arith.constant 0 : index
    %2 = vector.load %arg2[%c0_1, %c0_2] : memref<1x128xi32, #tpu.memory_space<vmem>>, vector<1x128xi32>
    %c0_3 = arith.constant 0 : index
    %c0_4 = arith.constant 0 : index
    %3 = vector.load %arg3[%c0_3, %c0_4] : memref<1x128xf32, #tpu.memory_space<vmem>>, vector<1x128xf32>
    %c128_i32 = arith.constant 128 : i32
    %4 = arith.muli %arg0, %c128_i32 : i32
    %5 = tpu.iota {dimensions = array<i32: 1>} : vector<1x128xi32>
    %6 = vector.broadcast %4 : i32 to vector<1x128xi32>
    %7 = arith.addi %6, %5 : vector<1x128xi32>
    %c8_i32 = arith.constant 8 : i32
    %8 = vector.broadcast %c8_i32 : i32 to vector<1x128xi32>
    %9 = arith.cmpi slt, %7, %8 : vector<1x128xi32>
    %cst = arith.constant dense<0xFF800000> : vector<128xf32>
    %10 = vector.multi_reduction <maximumf>, %1, %cst [0] : vector<4x128xf32> to vector<128xf32>
    %11 = vector.shape_cast %10 : vector<128xf32> to vector<1x128xf32>
    %12 = vector.broadcast %11 : vector<1x128xf32> to vector<4x128xf32>
    %13 = arith.subf %1, %12 : vector<4x128xf32>
    %14 = math.exp %13 : vector<4x128xf32>
    %cst_5 = arith.constant dense<0.000000e+00> : vector<128xf32>
    %15 = vector.multi_reduction <add>, %14, %cst_5 [0] : vector<4x128xf32> to vector<128xf32>
    %16 = vector.shape_cast %15 : vector<128xf32> to vector<1x128xf32>
    %17 = math.log %16 : vector<1x128xf32>
    %18 = arith.addf %11, %17 : vector<1x128xf32>
    %19 = tpu.iota {dimensions = array<i32: 0>} : vector<4x128xi32>
    %20 = vector.broadcast %2 : vector<1x128xi32> to vector<4x128xi32>
    %21 = arith.cmpi eq, %19, %20 : vector<4x128xi32>
    %cst_6 = arith.constant 0.000000e+00 : f32
    %22 = vector.broadcast %cst_6 : f32 to vector<4x128xf32>
    %23 = arith.select %21, %1, %22 : vector<4x128xi1>, vector<4x128xf32>
    %cst_7 = arith.constant dense<0.000000e+00> : vector<128xf32>
    %24 = vector.multi_reduction <add>, %23, %cst_7 [0] : vector<4x128xf32> to vector<128xf32>
    %25 = vector.shape_cast %24 : vector<128xf32> to vector<1x128xf32>
    %26 = arith.subf %18, %25 : vector<1x128xf32>
    %27 = arith.mulf %3, %26 : vector<1x128xf32>
    %cst_8 = arith.constant 0.000000e+00 : f32
    %28 = vector.broadcast %cst_8 : f32 to vector<1x128xf32>
    %29 = arith.select %9, %27, %28 : vector<1x128xi1>, vector<1x128xf32>
    %30 = vector.shape_cast %29 : vector<1x128xf32> to vector<1x1x128xf32>
    %cst_9 = arith.constant dense<0.000000e+00> : vector<1xf32>
    %31 = vector.multi_reduction <add>, %30, %cst_9 [1, 2] : vector<1x1x128xf32> to vector<1xf32>
    %32 = vector.shape_cast %31 : vector<1xf32> to vector<1x1x1xf32>
    %33 = vector.extract %32[0, 0, 0] : f32 from vector<1x1x1xf32>
    %cst_10 = arith.constant 0.000000e+00 : f32
    %34 = vector.broadcast %cst_10 : f32 to vector<1x128xf32>
    %35 = arith.select %9, %3, %34 : vector<1x128xi1>, vector<1x128xf32>
    %36 = vector.shape_cast %35 : vector<1x128xf32> to vector<1x1x128xf32>
    %cst_11 = arith.constant dense<0.000000e+00> : vector<1xf32>
    %37 = vector.multi_reduction <add>, %36, %cst_11 [1, 2] : vector<1x1x128xf32> to vector<1xf32>
    %38 = vector.shape_cast %37 : vector<1xf32> to vector<1x1x1xf32>
    %39 = vector.extract %38[0, 0, 0] : f32 from vector<1x1x1xf32>
    %40 = tpu.iota {dimensions = array<i32: 1>} : vector<1x8x128xi32>
    %41 = tpu.iota {dimensions = array<i32: 2>} : vector<1x8x128xi32>
    %c0_i32 = arith.constant 0 : i32
    %42 = vector.broadcast %c0_i32 : i32 to vector<1x8x128xi32>
    %43 = arith.cmpi eq, %40, %42 : vector<1x8x128xi32>
    %c0_i32_12 = arith.constant 0 : i32
    %44 = vector.broadcast %c0_i32_12 : i32 to vector<1x8x128xi32>
    %45 = arith.cmpi eq, %41, %44 : vector<1x8x128xi32>
    %46 = arith.andi %43, %45 : vector<1x8x128xi1>
    %c0_i32_13 = arith.constant 0 : i32
    %47 = vector.broadcast %c0_i32_13 : i32 to vector<1x8x128xi32>
    %48 = arith.cmpi eq, %40, %47 : vector<1x8x128xi32>
    %c1_i32 = arith.constant 1 : i32
    %49 = vector.broadcast %c1_i32 : i32 to vector<1x8x128xi32>
    %50 = arith.cmpi eq, %41, %49 : vector<1x8x128xi32>
    %51 = arith.andi %48, %50 : vector<1x8x128xi1>
    %cst_14 = arith.constant 0.000000e+00 : f32
    %52 = vector.broadcast %39 : f32 to vector<1x8x128xf32>
    %53 = vector.broadcast %cst_14 : f32 to vector<1x8x128xf32>
    %54 = arith.select %51, %52, %53 : vector<1x8x128xi1>, vector<1x8x128xf32>
    %55 = vector.broadcast %33 : f32 to vector<1x8x128xf32>
    %56 = arith.select %46, %55, %54 : vector<1x8x128xi1>, vector<1x8x128xf32>
    %c0_15 = arith.constant 0 : index
    %c0_16 = arith.constant 0 : index
    %c0_17 = arith.constant 0 : index
    %57 = vector.load %arg4[%c0_15, %c0_16, %c0_17] : memref<1x8x128xf32, #tpu.memory_space<vmem>>, vector<1x8x128xf32>
    tpu.vector_store %arg4[%c0_15, %c0_16, %c0_17], %56 {strides = array<i32>} : memref<1x8x128xf32, #tpu.memory_space<vmem>>, vector<1x8x128xf32>,
    return
  }
  func.func @transform_0(%arg0: i32) -> (i32, i32) {
    %c0_i32 = arith.constant 0 : i32
    %c0_i32_0 = arith.constant 0 : i32
    return %arg0, %c0_i32 : i32, i32
  }
  func.func @transform_1(%arg0: i32) -> (i32, i32) {
    %c0_i32 = arith.constant 0 : i32
    %c0_i32_0 = arith.constant 0 : i32
    return %c0_i32, %arg0 : i32, i32
  }
  func.func @transform_2(%arg0: i32) -> (i32, i32) {
    %c0_i32 = arith.constant 0 : i32
    %c0_i32_0 = arith.constant 0 : i32
    return %c0_i32, %arg0 : i32, i32
  }
  func.func @transform_3(%arg0: i32) -> (i32, i32, i32) {
    %c0_i32 = arith.constant 0 : i32
    %c0_i32_0 = arith.constant 0 : i32
    %c0_i32_1 = arith.constant 0 : i32
    return %arg0, %c0_i32, %c0_i32_0 : i32, i32, i32
  }
}

module attributes {stable_mosaic.version = 11 : i64} {
  func.func @_wce_kernel_rows(%arg0: i32, %arg1: memref<128x4xf32, #tpu.memory_space<vmem>>, %arg2: memref<128x1xi32, #tpu.memory_space<vmem>>, %arg3: memref<128x1xf32, #tpu.memory_space<vmem>>, %arg4: memref<1x8x128xf32, #tpu.memory_space<vmem>>) attributes {dimension_semantics = [#tpu.dimension_semantics<parallel>], iteration_bounds = array<i64: 1>, scalar_prefetch = 0 : i64, scratch_operands = 0 : i64, tpu.core_type = #tpu.core_type<tc>, window_params = [{transform_indices = @transform_0, window_bounds = array<i64: 128, 4>}, {transform_indices = @transform_1, window_bounds = array<i64: 128, 1>}, {transform_indices = @transform_2, window_bounds = array<i64: 128, 1>}, {transform_indices = @transform_3, window_bounds = array<i64: 1, 8, 128>}]} {
    %c0 = arith.constant 0 : index
    %c0_0 = arith.constant 0 : index
    %0 = vector.load %arg1[%c0, %c0_0] : memref<128x4xf32, #tpu.memory_space<vmem>>, vector<128x4xf32>
    %c0_1 = arith.constant 0 : index
    %c0_2 = arith.constant 0 : index
    %1 = vector.load %arg2[%c0_1, %c0_2] : memref<128x1xi32, #tpu.memory_space<vmem>>, vector<128x1xi32>
    %c0_3 = arith.constant 0 : index
    %c0_4 = arith.constant 0 : index
    %2 = vector.load %arg3[%c0_3, %c0_4] : memref<128x1xf32, #tpu.memory_space<vmem>>, vector<128x1xf32>
    %c128_i32 = arith.constant 128 : i32
    %3 = arith.muli %arg0, %c128_i32 : i32
    %4 = tpu.iota {dimensions = array<i32: 0>} : vector<128x1xi32>
    %5 = vector.broadcast %3 : i32 to vector<128x1xi32>
    %6 = arith.addi %5, %4 : vector<128x1xi32>
    %c8_i32 = arith.constant 8 : i32
    %7 = vector.broadcast %c8_i32 : i32 to vector<128x1xi32>
    %8 = arith.cmpi slt, %6, %7 : vector<128x1xi32>
    %cst = arith.constant dense<0xFF800000> : vector<128xf32>
    %9 = vector.multi_reduction <maximumf>, %0, %cst [1] : vector<128x4xf32> to vector<128xf32>
    %10 = vector.shape_cast %9 : vector<128xf32> to vector<128x1xf32>
    %11 = vector.broadcast %10 : vector<128x1xf32> to vector<128x4xf32>
    %12 = arith.subf %0, %11 : vector<128x4xf32>
    %13 = math.exp %12 : vector<128x4xf32>
    %cst_5 = arith.constant dense<0.000000e+00> : vector<128xf32>
    %14 = vector.multi_reduction <add>, %13, %cst_5 [1] : vector<128x4xf32> to vector<128xf32>
    %15 = vector.shape_cast %14 : vector<128xf32> to vector<128x1xf32>
    %16 = math.log %15 : vector<128x1xf32>
    %17 = arith.addf %10, %16 : vector<128x1xf32>
    %18 = tpu.iota {dimensions = array<i32: 1>} : vector<128x4xi32>
    %19 = vector.broadcast %1 : vector<128x1xi32> to vector<128x4xi32>
    %20 = arith.cmpi eq, %18, %19 : vector<128x4xi32>
    %cst_6 = arith.constant 0.000000e+00 : f32
    %21 = vector.broadcast %cst_6 : f32 to vector<128x4xf32>
    %22 = arith.select %20, %0, %21 : vector<128x4xi1>, vector<128x4xf32>
    %cst_7 = arith.constant dense<0.000000e+00> : vector<128xf32>
    %23 = vector.multi_reduction <add>, %22, %cst_7 [1] : vector<128x4xf32> to vector<128xf32>
    %24 = vector.shape_cast %23 : vector<128xf32> to vector<128x1xf32>
    %25 = arith.subf %17, %24 : vector<128x1xf32>
    %26 = arith.mulf %2, %25 : vector<128x1xf32>
    %cst_8 = arith.constant 0.000000e+00 : f32
    %27 = vector.broadcast %cst_8 : f32 to vector<128x1xf32>
    %28 = arith.select %8, %26, %27 : vector<128x1xi1>, vector<128x1xf32>
    %29 = vector.shape_cast %28 : vector<128x1xf32> to vector<1x128x1xf32>
    %cst_9 = arith.constant dense<0.000000e+00> : vector<1xf32>
    %30 = vector.multi_reduction <add>, %29, %cst_9 [1, 2] : vector<1x128x1xf32> to vector<1xf32>
    %31 = vector.shape_cast %30 : vector<1xf32> to vector<1x1x1xf32>
    %32 = vector.extract %31[0, 0, 0] : f32 from vector<1x1x1xf32>
    %cst_10 = arith.constant 0.000000e+00 : f32
    %33 = vector.broadcast %cst_10 : f32 to vector<128x1xf32>
    %34 = arith.select %8, %2, %33 : vector<128x1xi1>, vector<128x1xf32>
    %35 = vector.shape_cast %34 : vector<128x1xf32> to vector<1x128x1xf32>
    %cst_11 = arith.constant dense<0.000000e+00> : vector<1xf32>
    %36 = vector.multi_reduction <add>, %35, %cst_11 [1, 2] : vector<1x128x1xf32> to vector<1xf32>
    %37 = vector.shape_cast %36 : vector<1xf32> to vector<1x1x1xf32>
    %38 = vector.extract %37[0, 0, 0] : f32 from vector<1x1x1xf32>
    %39 = tpu.iota {dimensions = array<i32: 1>} : vector<1x8x128xi32>
    %40 = tpu.iota {dimensions = array<i32: 2>} : vector<1x8x128xi32>
    %c0_i32 = arith.constant 0 : i32
    %41 = vector.broadcast %c0_i32 : i32 to vector<1x8x128xi32>
    %42 = arith.cmpi eq, %39, %41 : vector<1x8x128xi32>
    %c0_i32_12 = arith.constant 0 : i32
    %43 = vector.broadcast %c0_i32_12 : i32 to vector<1x8x128xi32>
    %44 = arith.cmpi eq, %40, %43 : vector<1x8x128xi32>
    %45 = arith.andi %42, %44 : vector<1x8x128xi1>
    %c0_i32_13 = arith.constant 0 : i32
    %46 = vector.broadcast %c0_i32_13 : i32 to vector<1x8x128xi32>
    %47 = arith.cmpi eq, %39, %46 : vector<1x8x128xi32>
    %c1_i32 = arith.constant 1 : i32
    %48 = vector.broadcast %c1_i32 : i32 to vector<1x8x128xi32>
    %49 = arith.cmpi eq, %40, %48 : vector<1x8x128xi32>
    %50 = arith.andi %47, %49 : vector<1x8x128xi1>
    %cst_14 = arith.constant 0.000000e+00 : f32
    %51 = vector.broadcast %38 : f32 to vector<1x8x128xf32>
    %52 = vector.broadcast %cst_14 : f32 to vector<1x8x128xf32>
    %53 = arith.select %50, %51, %52 : vector<1x8x128xi1>, vector<1x8x128xf32>
    %54 = vector.broadcast %32 : f32 to vector<1x8x128xf32>
    %55 = arith.select %45, %54, %53 : vector<1x8x128xi1>, vector<1x8x128xf32>
    %c0_15 = arith.constant 0 : index
    %c0_16 = arith.constant 0 : index
    %c0_17 = arith.constant 0 : index
    %56 = vector.load %arg4[%c0_15, %c0_16, %c0_17] : memref<1x8x128xf32, #tpu.memory_space<vmem>>, vector<1x8x128xf32>
    tpu.vector_store %arg4[%c0_15, %c0_16, %c0_17], %55 {strides = array<i32>} : memref<1x8x128xf32, #tpu.memory_space<vmem>>, vector<1x8x128xf32>,
    return
  }
  func.func @transform_0(%arg0: i32) -> (i32, i32) {
    %c0_i32 = arith.constant 0 : i32
    %c0_i32_0 = arith.constant 0 : i32
    return %arg0, %c0_i32 : i32, i32
  }
  func.func @transform_1(%arg0: i32) -> (i32, i32) {
    %c0_i32 = arith.constant 0 : i32
    %c0_i32_0 = arith.constant 0 : i32
    return %arg0, %c0_i32 : i32, i32
  }
  func.func @transform_2(%arg0: i32) -> (i32, i32) {
    %c0_i32 = arith.constant 0 : i32
    %c0_i32_0 = arith.constant 0 : i32
    return %arg0, %c0_i32 : i32, i32
  }
  func.func @transform_3(%arg0: i32) -> (i32, i32, i32) {
    %c0_i32 = arith.constant 0 : i32
    %c0_i32_0 = arith.constant 0 : i32
    %c0_i32_1 = arith.constant 0 : i32
    return %arg0, %c0_i32, %c0_i32_0 : i32, i32, i32
  }
}

</mosaic_0001>

<bundles_post_ra>
// kernel: tpu_custom_call.1
= control target key start
LH: loop header
LB: loop body
LE: loop exit
PB: predicated region body
PF: predicated region fallthrough
CT: control target
= control target key end

     0   :  { %s280_s0 = inlined_call_operand.vmem [shape: f32[8,4], index: 0, kind: input, shape index: {}]   ;;  %s281_s1 = inlined_call_operand.vmem [shape: s32[1,8], index: 1, kind: input, shape index: {}]   ;;  %s282_s2 = inlined_call_operand.vmem [shape: f32[1,8], index: 2, kind: input, shape index: {}]   ;;  %s283_s3 = inlined_call_operand.hbm [shape: f32[1,8,128], index: 3, kind: output, shape index: {}]  }
   0x1   :  { %v15_v0 = vld [vmem:[%s280_s0] sm:$0xff]  ;;  %v16_v1 = vld [vmem:[%s280_s0 + $0x8] sm:$0xff] }
   0x2   :  { %31 = vxpose.xlu0.b32.start [1/16] (narrow) %v15_v0, 8 }
   0x6   :  { %32 = vxpose.xlu0.b32.cont [2/16] (narrow) %v16_v1, 8 }
   0x7   :  { %8 = vsyncpa [#allocation3], 0  ;;  %v17_v2 = vld [vmem:[%s280_s0 + $0x10] sm:$0xff]  ;;  %v18_v3 = vld [vmem:[%s280_s0 + $0x18] sm:$0xff]  ;;  %vm71_vm0 = vcmask 1043456   ;;  %v66_v26 = vlaneseq  ;;  %vm110_vm3 = vcmask 1040384  }
   0x8   :  { %v19_v4 = vld [vmem:[%s280_s0 + $0x20] sm:$0xff]  ;;  %v20_v5 = vld [vmem:[%s280_s0 + $0x28] sm:$0xff]  ;;  %v21_v6 = vld [vmem:[%s280_s0 + $0x30] sm:$0xff]  ;;  %s190_s19 = smov [#allocation2]  }
   0x9   :  { %v22_v7 = vld [vmem:[%s280_s0 + $0x38] sm:$0xff]  ;;  %v23_v8 = vld [vmem:[%s280_s0 + $0x40] sm:$0xff]  ;;  %v24_v9 = vld [vmem:[%s280_s0 + $0x48] sm:$0xff]  ;;  %v93_v27 = vshrl.u32 %v66_v26, 7  ;;  %v67_v46 = vand.u32 127, %v66_v26  ;;  %s148_s20 = sshll.u32 %s190_s19, 4  ;;  %s149_s20 = int_to_ptr.vmem [resolvable:$true] %s148_s20 }
   0xa   :  { %33 = vxpose.xlu0.b32.cont [3/16] (narrow) %v17_v2, 8  ;;  %v25_v10 = vld [vmem:[%s280_s0 + $0x50] sm:$0xff]  ;;  %v26_v11 = vld [vmem:[%s280_s0 + $0x58] sm:$0xff]  ;;  %v27_v12 = vld [vmem:[%s280_s0 + $0x60] sm:$0xff]  ;;  %s166_s22 = scalar_lea.vmem %s149_s20, 128  ;;  %p171_p1 = scmp.lt.s32.totalorder %s149_s20, %s149_s20 }
   0xb   :  { %v28_v13 = vld [vmem:[%s280_s0 + $0x68] sm:$0xff]  ;;  %v29_v14 = vld [vmem:[%s280_s0 + $0x70] sm:$0xff]  ;;  %v30_v15 = vld [vmem:[%s280_s0 + $0x78] sm:$0xff]  ;;  %vm70_vm2 = vcmp.lt.s32.totalorder %v67_v46, 8  ;;  %vm132_vm4 = vcmp.eq.s32.totalorder %v93_v27, 0  ;;  %vm135_vm5 = vcmp.eq.s32.totalorder %v67_v46, 1  ;;  %p167_p0 = scmp.ne.s32.totalorder %s149_s20, %s166_s22  ;;  %p172_p2 = scmp.lt.s32.totalorder %s166_s22, %s166_s22 }
   0xc   :  { %v156_v28 = vld [vmem:[%s281_s1] ss:$0 sm:$0xff]  ;;  %vm133_vm6 = vcmp.eq.s32.totalorder %v67_v46, 0  ;;  %vm136_vm7 = vmand %vm132_vm4, %vm135_vm5 }
   0xd   :  { %vm98_vm1 = vcmp.eq.s32.totalorder %v93_v27, %v156_v28  ;;  %v64_v49 = vld [vmem:[%s282_s2] sm:$0x1]  ;;  %vm134_vm8 = vmand %vm132_vm4, %vm133_vm6  ;;  %p173_p3 = por %p172_p2, %p171_p1 }
   0xe   :  { %34 = vxpose.xlu0.b32.cont [4/16] (narrow) %v18_v3, 8  ;;  %v121_v53 = vsel %vm70_vm2, %v64_v49, 0.0 }
   0xf   :  { %v122_v55 = vsel %vm110_vm3, %v121_v53, 0.0  ;;  %p174_p4 = pnand %p173_p3, %p167_p0 }
  0x12   :  { %35 = vxpose.xlu0.b32.cont [5/16] (narrow) %v19_v4, 8 }
  0x16   :  { %36 = vxpose.xlu0.b32.cont [6/16] (narrow) %v20_v5, 8 }
  0x1a   :  { %37 = vxpose.xlu0.b32.cont [7/16] (narrow) %v21_v6, 8 }
  0x1e   :  { %38 = vxpose.xlu0.b32.cont [8/16] (narrow) %v22_v7, 8 }
  0x22   :  { %39 = vxpose.xlu0.b32.cont [9/16] (narrow) %v23_v8, 8 }
  0x26   :  { %40 = vxpose.xlu0.b32.cont [10/16] (narrow) %v24_v9, 8 }
  0x2a   :  { %41 = vxpose.xlu0.b32.cont [11/16] (narrow) %v25_v10, 8 }
  0x2e   :  { %42 = vxpose.xlu0.b32.cont [12/16] (narrow) %v26_v11, 8 }
  0x32   :  { %43 = vxpose.xlu0.b32.cont [13/16] (narrow) %v27_v12, 8 }
  0x36   :  { %44 = vxpose.xlu0.b32.cont [14/16] (narrow) %v28_v13, 8 }
  0x3a   :  { %45 = vxpose.xlu0.b32.cont [15/16] (narrow) %v29_v14, 8 }
  0x3e   :  { %46 = vxpose.xlu0.b32.end [16/16] (narrow) %v30_v15, 8 }
  0x82   :  { %v47_v16 = vpop.trf.xlu0 }
  0x83   :  { %v72_v17 = vsel %vm71_vm0, %v47_v16, -inf  ;;  %v99_v31 = vsel %vm98_vm1, %v47_v16, 0.0 }
  0x84   :  { %v73_v18 = vrot.slane %v72_v17, 4  ;;  %v100_v34 = vsel %vm71_vm0, %v99_v31, 0.0 }
  0x85   :  { %v101_v36 = vrot.slane %v100_v34, 4 }
  0x86   :  { %v74_v19 = vmax.f32 %v72_v17, %v73_v18 }
  0x87   :  { %v102_v39 = vadd.f32 %v101_v36, %v100_v34 }
  0x88   :  { %v75_v20 = vrot.slane %v74_v19, 2 }
  0x89   :  { %v103_v41 = vrot.slane %v102_v39, 2 }
  0x8a   :  { %v76_v21 = vmax.f32 %v74_v19, %v75_v20 }
  0x8b   :  { %v104_v42 = vadd.f32 %v103_v41, %v102_v39 }
  0x8c   :  { %v77_v22 = vrot.slane %v76_v21, 1 }
  0x8d   :  { %v105_v43 = vrot.slane %v104_v42, 1 }
  0x8e   :  { %v78_v23 = vmax.f32 %v76_v21, %v77_v22 }
  0x8f   :  { %v106_v48 = vadd.f32 %v105_v43, %v104_v42 }
  0x90   :  { %v79_v24 = vsub.f32 %v47_v16, %v78_v23 }
  0x92   :  { %v80_v25 = vmul.f32 1.442695, %v79_v24 }
  0x94   :  { %162 = vpow2.f32 %v80_v25 }
  0x9e   :  { %v163_v29 = vpop.eup %162 }
  0x9f   :  { %v82_v30 = vsel %vm71_vm0, %v163_v29, 0.0 }
  0xa0   :  { %v83_v32 = vrot.slane %v82_v30, 4 }
  0xa2   :  { %v84_v33 = vadd.f32 %v83_v32, %v82_v30 }
  0xa4   :  { %v85_v35 = vrot.slane %v84_v33, 2 }
  0xa6   :  { %v86_v37 = vadd.f32 %v85_v35, %v84_v33 }
  0xa8   :  { %v87_v38 = vrot.slane %v86_v37, 1 }
  0xaa   :  { %v88_v40 = vadd.f32 %v87_v38, %v86_v37 }
  0xac   :  { %164 = vlog2.f32 %v88_v40 }
  0xb6   :  { %v165_v44 = vpop.eup %164 }
  0xb7   :  { %v90_v45 = vmul.f32 0.6931472, %v165_v44 }
  0xb9   :  { %v91_v47 = vadd.f32 %v90_v45, %v78_v23 }
  0xbb   :  { %v107_v50 = vsub.f32 %v91_v47, %v106_v48 }
  0xbd   :  { %v108_v51 = vmul.f32 %v107_v50, %v64_v49 }
  0xbf   :  { %v109_v52 = vsel %vm70_vm2, %v108_v51, 0.0 }
  0xc0   :  { %v111_v54 = vsel %vm110_vm3, %v109_v52, 0.0 }
  0xc1   :  { %112 = vadd.xlane.f32.xlu1 %v111_v54 }
  0xc5   :  { %123 = vadd.xlane.f32.xlu1 %v122_v55 }
 0x14e   :  { %v113_v56 = vpop.xlane.xlu1 %112 }
 0x14f   :  { %v114_v57 = vrot.slane %v113_v56, 4 }
 0x151   :  { %v115_v58 = vadd.f32 %v114_v57, %v113_v56 }
 0x152   :  { %v124_v59 = vpop.xlane.xlu1 %123 }
 0x153   :  { %v116_v60 = vrot.slane %v115_v58, 2  ;;  %v125_v61 = vrot.slane %v124_v59, 4 }
 0x155   :  { %v126_v62 = vadd.f32 %v125_v61, %v124_v59  ;;  %v117_v63 = vadd.f32 %v116_v60, %v115_v58 }
 0x157   :  { %v127_v0 = vrot.slane %v126_v62, 2  ;;  %v118_v1 = vrot.slane %v117_v63, 1 }
 0x159   :  { %v128_v2 = vadd.f32 %v127_v0, %v126_v62  ;;  %v119_v3 = vadd.f32 %v118_v1, %v117_v63 }
 0x15b   :  { %157 = vpush %v119_v3  ;;  %v129_v4 = vrot.slane %v128_v2, 1 }
 0x15d   :  { %v130_v5 = vadd.f32 %v129_v4, %v128_v2 }
 0x15f   :  { %159 = vpush %v130_v5 }
 0x18c   :  { %s158_s2 = spop %157 }
 0x18d   :  { %v139_v7 = vstv %s158_s2 }
 0x190   :  { %s160_s21 = spop %159 }
 0x191   :  { %v137_v6 = vstv %s160_s21 }
 0x192   :  { %v138_v8 = vsel %vm136_vm7, %v137_v6, 0.0 }
 0x193   :  { %v140_v9 = vsel %vm134_vm8, %v139_v7, %v138_v8 }
 0x194   :  { %141 = vst [vmem:[#allocation2] sm:$0xff] %v140_v9 }
 0x195   :  { %177 = shalt.err (!%p174_p4)
}
 0x196   :  { %s178_s25 = scalar_lea.hbm %s283_s3, 128 }
 0x197   :  { %p179_p5 = scmp.ne.s32.totalorder %s283_s3, %s178_s25  ;;  %p182_p6 = scmp.lt.u32.totalorder %s178_s25, %s283_s3 }
 0x199   :  { %p184_p7 = pnand %p182_p6, %p179_p5 }
 0x19b   :  { %187 = shalt.err (!%p184_p7)
}
 0x19c   :  { %151 = dma.vmem_to_hbm [thread:$0]  %s149_s20, 128, %s283_s3, [#allocation3]  }
 0x19d   :  { %188 = dma.done.wait [#allocation3], 128  }
 0x19e   :  { %189 = vsyncadd [#allocation3], 4294967168 }
 0x19f   :  { %155 = vsyncpa [#allocation3], 1 }

// kernel: tpu_custom_call.1
= control target key start
LH: loop header
LB: loop body
LE: loop exit
PB: predicated region body
PF: predicated region fallthrough
CT: control target
= control target key end

     0   :  { %vm114_vm0 = vcmask 31744   ;;  %s687_s0 = inlined_call_operand.vmem [shape: f32[8,4], index: 0, kind: input, shape index: {}]   ;;  %s688_s1 = inlined_call_operand.vmem [shape: s32[8,1], index: 1, kind: input, shape index: {}]   ;;  %s689_s2 = inlined_call_operand.vmem [shape: f32[8,1], index: 2, kind: input, shape index: {}]   ;;  %s690_s3 = inlined_call_operand.hbm [shape: f32[1,8,128], index: 3, kind: output, shape index: {}]  }
   0x1   :  { %v15_v0 = vld [vmem:[%s687_s0] sm:$0xff] }
   0x2   :  { %8 = vsyncpa [#allocation3], 0  ;;  %v115_v1 = vsel %vm114_vm0, %v15_v0, -inf  ;;  %v641_v2 = vmov 0   ;;  %v31_v3 = vld [vmem:[%s688_s1] sm:$0xff]  ;;  %v64_v7 = vlaneseq  ;;  %vm485_vm2 = vcmask 7168  }
   0x3   :  { %612 = vset.pattern.permute.xlu0 %v641_v2  ;;  %v47_v19 = vld [vmem:[%s689_s2] sm:$0xff]  ;;  %s642_s16 = smov [#allocation2]  }
   0x4   :  { %116 = vmax.xlane.f32.xlu0 %v115_v1  ;;  %v308_v8 = vand.u32 127, %v64_v7  ;;  %v542_v23 = vsel %vm485_vm2, %v47_v19, 0.0  ;;  %v65_v38 = vshrl.u32 %v64_v7, 7  ;;  %s598_s17 = sshll.u32 %s642_s16, 4  ;;  %s599_s17 = int_to_ptr.vmem [resolvable:$true] %s598_s17 }
   0x5   :  { %s617_s19 = scalar_lea.vmem %s599_s17, 128  ;;  %p622_p1 = scmp.lt.s32.totalorder %s599_s17, %s599_s17 }
   0x6   :  { %vm582_vm3 = vcmp.eq.s32.totalorder %v65_v38, 0  ;;  %vm585_vm4 = vcmp.eq.s32.totalorder %v308_v8, 1  ;;  %vm583_vm5 = vcmp.eq.s32.totalorder %v308_v8, 0  ;;  %p618_p0 = scmp.ne.s32.totalorder %s599_s17, %s617_s19  ;;  %p623_p2 = scmp.lt.s32.totalorder %s617_s19, %s617_s19 }
   0x7   :  { %vm586_vm6 = vmand %vm582_vm3, %vm585_vm4 }
   0x8   :  { %vm584_vm7 = vmand %vm582_vm3, %vm583_vm5  ;;  %p624_p3 = por %p623_p2, %p622_p1 }
   0xa   :  { %p625_p4 = pnand %p624_p3, %p618_p0 }
  0x1a   :  { %310 = vperm.xlu0 %612, %v31_v3  }
  0x91   :  { %v117_v4 = vpop.xlane.xlu0 %116 }
  0x92   :  { %v163_v5 = vsub.f32 %v15_v0, %v117_v4 }
  0x94   :  { %v179_v6 = vmul.f32 1.442695, %v163_v5 }
  0x96   :  { %613 = vpow2.f32 %v179_v6 }
  0x99   :  { %v311_v9 = vpop.permute.xlu0 %310 }
  0x9a   :  { %vm357_vm1 = vcmp.eq.s32.totalorder %v308_v8, %v311_v9 }
  0x9b   :  { %v373_v11 = vsel %vm357_vm1, %v15_v0, 0.0 }
  0x9c   :  { %v389_v13 = vsel %vm114_vm0, %v373_v11, 0.0 }
  0xa0   :  { %v614_v10 = vpop.eup %613 }
  0xa1   :  { %v211_v12 = vsel %vm114_vm0, %v614_v10, 0.0 }
  0xa2   :  { %212 = vadd.xlane.f32.xlu1 %v211_v12 }
  0xa6   :  { %390 = vadd.xlane.f32.xlu1 %v389_v13 }
 0x12f   :  { %v213_v14 = vpop.xlane.xlu1 %212 }
 0x130   :  { %615 = vlog2.f32 %v213_v14 }
 0x133   :  { %v391_v17 = vpop.xlane.xlu1 %390 }
 0x13a   :  { %v616_v15 = vpop.eup %615 }
 0x13b   :  { %v260_v16 = vmul.f32 0.6931472, %v616_v15 }
 0x13d   :  { %v291_v18 = vadd.f32 %v260_v16, %v117_v4 }
 0x13f   :  { %v437_v20 = vsub.f32 %v291_v18, %v391_v17 }
 0x141   :  { %v453_v21 = vmul.f32 %v437_v20, %v47_v19 }
 0x143   :  { %v486_v22 = vsel %vm485_vm2, %v453_v21, 0.0 }
 0x144   :  { %517 = vadd.xlane.f32.xlu1 %v486_v22 }
 0x148   :  { %573 = vadd.xlane.f32.xlu1 %v542_v23 }
 0x1d1   :  { %v518_v24 = vpop.xlane.xlu1 %517 }
 0x1d2   :  { %v519_v25 = vrot.slane %v518_v24, 4 }
 0x1d4   :  { %v520_v26 = vadd.f32 %v519_v25, %v518_v24 }
 0x1d5   :  { %v574_v27 = vpop.xlane.xlu1 %573 }
 0x1d6   :  { %v521_v28 = vrot.slane %v520_v26, 2  ;;  %v575_v29 = vrot.slane %v574_v27, 4 }
 0x1d8   :  { %v576_v30 = vadd.f32 %v575_v29, %v574_v27  ;;  %v522_v31 = vadd.f32 %v521_v28, %v520_v26 }
 0x1da   :  { %v577_v32 = vrot.slane %v576_v30, 2  ;;  %v523_v33 = vrot.slane %v522_v31, 1 }
 0x1dc   :  { %v578_v34 = vadd.f32 %v577_v32, %v576_v30  ;;  %v524_v35 = vadd.f32 %v523_v33, %v522_v31 }
 0x1de   :  { %606 = vpush %v524_v35  ;;  %v579_v36 = vrot.slane %v578_v34, 1 }
 0x1e0   :  { %v580_v37 = vadd.f32 %v579_v36, %v578_v34 }
 0x1e2   :  { %608 = vpush %v580_v37 }
 0x20f   :  { %s607_s2 = spop %606 }
 0x210   :  { %v589_v40 = vstv %s607_s2 }
 0x213   :  { %s609_s18 = spop %608 }
 0x214   :  { %v587_v39 = vstv %s609_s18 }
 0x215   :  { %v588_v41 = vsel %vm586_vm6, %v587_v39, 0.0 }
 0x216   :  { %v590_v42 = vsel %vm584_vm7, %v589_v40, %v588_v41 }
 0x217   :  { %591 = vst [vmem:[#allocation2] sm:$0xff] %v590_v42 }
 0x218   :  { %628 = shalt.err (!%p625_p4)
}
 0x219   :  { %s629_s22 = scalar_lea.hbm %s690_s3, 128 }
 0x21a   :  { %p630_p5 = scmp.ne.s32.totalorder %s690_s3, %s629_s22  ;;  %p633_p6 = scmp.lt.u32.totalorder %s629_s22, %s690_s3 }
 0x21c   :  { %p635_p7 = pnand %p633_p6, %p630_p5 }
 0x21e   :  { %638 = shalt.err (!%p635_p7)
}
 0x21f   :  { %601 = dma.vmem_to_hbm [thread:$0]  %s599_s17, 128, %s690_s3, [#allocation3]  }
 0x220   :  { %639 = dma.done.wait [#allocation3], 128  }
 0x221   :  { %640 = vsyncadd [#allocation3], 4294967168 }
 0x222   :  { %605 = vsyncpa [#allocation3], 1 }

</bundles_post_ra>
